<compile_context>
chip_gen: v5e
topology: v5e:2x2
jax: 0.10.0
libtpu: 0.0.40
codegen_flags: <defaults>
</compile_context>

<pallas_src>
import functools

import jax
import jax.numpy as jnp
from jax.experimental import pallas as pl
from jax.experimental.pallas import tpu as pltpu


def _round_up(x, m):
    return ((x + m - 1) // m) * m


def _chip_config():
    """Per-generation tiling / VMEM knobs; conservative fallback if unknown."""
    kind = ""
    try:
        kind = jax.devices()[0].device_kind.lower()
    except Exception:
        pass
    if "v7" in kind or "7x" in kind:
        # 64 MiB physical VMEM per TC, ~3.2 TB/s HBM, 2 TensorCores, bf16 VPU.
        return dict(target_bytes=6 << 20, vmem_cap=56 << 20, min_blocks=2,
                    bf16_valu=True)
    if "v6" in kind:
        # 128 MiB VMEM, ~1.4 TB/s HBM, 1 TC, bf16 VPU.
        return dict(target_bytes=4 << 20, vmem_cap=100 << 20, min_blocks=1,
                    bf16_valu=True)
    # v5e / unknown: slower HBM, no bf16 VALU/EUP — keep blocks modest.
    return dict(target_bytes=2 << 20, vmem_cap=64 << 20, min_blocks=1,
                bf16_valu=False)


def _estimate_vmem(tile_n, c, itemsize):
    """Rough scoped-VMEM footprint for one pipelined grid step."""
    logits_blocks = 2 * tile_n * c * itemsize        # double-buffered input slab
    targets_blocks = 2 * tile_n * 128 * 4            # (tile_n,1) i32, lane-padded, x2
    f32_temps = 2 * tile_n * c * 4                   # shifted / exp temporaries
    out_blocks = 2 * 8 * 128 * 4
    return logits_blocks + targets_blocks + f32_temps + out_blocks + (1 << 20)


def _choose_tile_n(n, c, itemsize, cfg):
    sublane = max(8, 32 // itemsize)                 # 8 f32 / 16 bf16 / 32 i8
    row_bytes = max(1, c * itemsize)
    # Cap by bytes (per-generation), not by a fixed row count.
    rows = (cfg["target_bytes"] // row_bytes) // sublane * sublane
    rows = max(sublane, rows)
    rows = min(rows, _round_up(n, sublane))
    # v7x megacore: make sure the "parallel" grid axis has >= 2 blocks.
    if cfg["min_blocks"] > 1 and rows >= _round_up(n, sublane) and n > sublane:
        rows = _round_up(-(-n // cfg["min_blocks"]), sublane)
    # Shrink until the estimated VMEM footprint (incl. lane-padded targets and
    # in-kernel f32 temporaries) fits comfortably inside the scoped budget.
    while rows > sublane and _estimate_vmem(rows, c, itemsize) > int(0.75 * cfg["vmem_cap"]):
        rows = _round_up(max(sublane, rows // 2), sublane)
    return rows


def _focal_nll_partial_kernel(logits_ref, target_ref, out_ref, *, n_valid,
                              defer_upcast):
    """Writes the partial sum of per-row NLL for this row block (lane-dense)."""
    i = pl.program_id(0)
    raw = logits_ref[...]                                   # (tn, C) input dtype
    tgt = target_ref[...]                                   # (tn, 1) int32
    tn, c = raw.shape

    # bf16 VALU path (v6e/v7x): keep the two widest element passes (max-reduce
    # and subtract) in packed bf16; upcast only at the exp input.
    work = raw if defer_upcast else raw.astype(jnp.float32)
    row_max = jnp.max(work, axis=-1, keepdims=True)                          # (tn, 1)
    shifted = work - row_max                                                 # (tn, C)
    sum_exp = jnp.sum(jnp.exp(shifted.astype(jnp.float32)),
                      axis=-1, keepdims=True)                                # (tn, 1)

    # Gather the target-class logit from the RAW logits (packed-dtype select;
    # the f32 shifted slab need not stay live across two reduction passes).
    col_ids = jax.lax.broadcasted_iota(jnp.int32, (tn, c), 1)                # (tn, C)
    picked = jnp.sum(jnp.where(col_ids == tgt, raw, jnp.zeros((), raw.dtype)),
                     axis=-1, keepdims=True).astype(jnp.float32)             # (tn, 1)

    # Per-row NLL: lse - logit_t = log(sum_exp) + row_max - picked.
    nll = jnp.log(sum_exp) + row_max.astype(jnp.float32) - picked            # (tn, 1)

    # Mask rows that are padding of the (possibly partial) last block.
    row_ids = jax.lax.broadcasted_iota(jnp.int32, (tn, 1), 0) + i * tn
    nll = jnp.where(row_ids < n_valid, nll, 0.0)

    partial = jnp.sum(nll)                                                   # scalar
    out_ref[...] = jnp.broadcast_to(partial, out_ref.shape).astype(jnp.float32)


def focal_loss(logits, targets, focusing_param=2, balance_param=0.25, tile_n=None):
    """logits: (N, C) float (f32 or bf16), targets: (N,) int class indices.

    Returns a scalar f32 matching the PyTorch FocalLoss.forward semantics.
    """
    n, c = logits.shape
    itemsize = jnp.dtype(logits.dtype).itemsize
    cfg = _chip_config()
    sublane = max(8, 32 // itemsize)

    if tile_n is None:
        tile_n = _choose_tile_n(n, c, itemsize, cfg)
    else:
        tile_n = _round_up(min(tile_n, _round_up(n, sublane)), sublane)

    padded_n = _round_up(n, tile_n)
    num_blocks = padded_n // tile_n

    targets2d = targets.astype(jnp.int32).reshape(n, 1)
    if padded_n != n:
        logits = jnp.pad(logits, ((0, padded_n - n), (0, 0)))
        targets2d = jnp.pad(targets2d, ((0, padded_n - n), (0, 0)))

    # Deferred upcast only for bf16 inputs on chips with bf16 VALU (v6e/v7x);
    # f32 inputs (and v5e) keep the full-f32 compute path for accuracy.
    defer_upcast = bool(cfg["bf16_valu"]) and logits.dtype == jnp.bfloat16
    kernel = functools.partial(_focal_nll_partial_kernel, n_valid=n,
                               defer_upcast=defer_upcast)

    vmem_limit = int(min(cfg["vmem_cap"],
                         max(32 << 20, int(1.5 * _estimate_vmem(tile_n, c, itemsize)))))

    partials = pl.pallas_call(
        kernel,
        out_shape=jax.ShapeDtypeStruct((num_blocks, 8, 128), jnp.float32),
        grid=(num_blocks,),
        in_specs=[
            pl.BlockSpec((tile_n, c), lambda i: (i, 0)),   # logits row block
            pl.BlockSpec((tile_n, 1), lambda i: (i, 0)),   # targets row block
        ],
        out_specs=pl.BlockSpec((1, 8, 128), lambda i: (i, 0, 0)),
        compiler_params=pltpu.CompilerParams(
            dimension_semantics=("parallel",),
            vmem_limit_bytes=vmem_limit),
    )(logits, targets2d)

    # Scalar epilogue in the wrapper (few scalar ops; keeps the grid parallel).
    total_nll = jnp.sum(partials[:, 0, 0])
    ce = total_nll / jnp.float32(n)
    logpt = -ce
    pt = jnp.exp(logpt)
    one_minus_pt = 1.0 - pt
    if isinstance(focusing_param, int):
        modulator = jax.lax.integer_pow(one_minus_pt, focusing_param)
    else:
        modulator = one_minus_pt ** focusing_param
    focal = -modulator * logpt
    return jnp.float32(balance_param) * focal


def _focal_loss_ref(logits, targets, focusing_param=2, balance_param=0.25):
    """Plain-JAX reference matching torch semantics."""
    logits = logits.astype(jnp.float32)
    lse = jax.nn.logsumexp(logits, axis=-1)
    picked = jnp.take_along_axis(logits, targets[:, None].astype(jnp.int32),
                                 axis=-1)[:, 0]
    ce = jnp.mean(lse - picked)
    logpt = -ce
    pt = jnp.exp(logpt)
    focal = -((1.0 - pt) ** focusing_param) * logpt
    return balance_param * focal


if __name__ == "__main__":
    key = jax.random.PRNGKey(0)
    k1, k2, k3, k4, k5, k6 = jax.random.split(key, 6)

    # Case 1: small single-block f32 problem (auto tile).
    n1, c1 = 8, 32
    logits1 = jax.random.normal(k1, (n1, c1), dtype=jnp.float32)
    tgt1 = jax.random.randint(k2, (n1,), 0, c1, dtype=jnp.int32)
    out1 = jax.block_until_ready(focal_loss(logits1, tgt1,
                                            focusing_param=2, balance_param=0.25))
    ref1 = _focal_loss_ref(logits1, tgt1, focusing_param=2, balance_param=0.25)
    assert jnp.allclose(out1, ref1, rtol=1e-5, atol=1e-6), (out1, ref1)

    # Case 2: multiple grid blocks with a padded last block (exercises the
    # parallel partial-sum path and the padded-row masking).
    n2, c2 = 40, 32
    logits2 = jax.random.normal(k3, (n2, c2), dtype=jnp.float32)
    tgt2 = jax.random.randint(k4, (n2,), 0, c2, dtype=jnp.int32)
    out2 = jax.block_until_ready(focal_loss(logits2, tgt2,
                                            focusing_param=2, balance_param=0.25,
                                            tile_n=16))
    ref2 = _focal_loss_ref(logits2, tgt2, focusing_param=2, balance_param=0.25)
    assert jnp.allclose(out2, ref2, rtol=1e-5, atol=1e-6), (out2, ref2)

    # Case 3: bf16 ingest (exercises the deferred-upcast / packed-select path
    # on v6e/v7x; falls back to the f32 path on v5e). Reference is computed on
    # the same bf16-rounded logits, so only in-kernel bf16 rounding differs.
    n3, c3 = 64, 128
    logits3 = jax.random.normal(k5, (n3, c3), dtype=jnp.float32).astype(jnp.bfloat16)
    tgt3 = jax.random.randint(k6, (n3,), 0, c3, dtype=jnp.int32)
    out3 = jax.block_until_ready(focal_loss(logits3, tgt3,
                                            focusing_param=2, balance_param=0.25))
    ref3 = _focal_loss_ref(logits3, tgt3, focusing_param=2, balance_param=0.25)
    assert jnp.allclose(out3, ref3, rtol=5e-2, atol=5e-3), (out3, ref3)

    print("KERNEL_OK")
</pallas_src>

<mosaic_0001>
module attributes {stable_mosaic.version = 11 : i64} {
  func.func @_focal_nll_partial_kernel(%arg0: i32, %arg1: memref<8x32xf32, #tpu.memory_space<vmem>>, %arg2: memref<8x1xi32, #tpu.memory_space<vmem>>, %arg3: memref<1x8x128xf32, #tpu.memory_space<vmem>>) attributes {dimension_semantics = [#tpu.dimension_semantics<parallel>], iteration_bounds = array<i64: 1>, scalar_prefetch = 0 : i64, scratch_operands = 0 : i64, tpu.core_type = #tpu.core_type<tc>, window_params = [{transform_indices = @transform_0, window_bounds = array<i64: 8, 32>}, {transform_indices = @transform_1, window_bounds = array<i64: 8, 1>}, {transform_indices = @transform_2, window_bounds = array<i64: 1, 8, 128>}]} {
    %c0 = arith.constant 0 : index
    %c0_0 = arith.constant 0 : index
    %0 = vector.load %arg1[%c0, %c0_0] : memref<8x32xf32, #tpu.memory_space<vmem>>, vector<8x32xf32>
    %c0_1 = arith.constant 0 : index
    %c0_2 = arith.constant 0 : index
    %1 = vector.load %arg2[%c0_1, %c0_2] : memref<8x1xi32, #tpu.memory_space<vmem>>, vector<8x1xi32>
    %cst = arith.constant dense<0xFF800000> : vector<8xf32>
    %2 = vector.multi_reduction <maximumf>, %0, %cst [1] : vector<8x32xf32> to vector<8xf32>
    %3 = vector.shape_cast %2 : vector<8xf32> to vector<8x1xf32>
    %4 = vector.broadcast %3 : vector<8x1xf32> to vector<8x32xf32>
    %5 = arith.subf %0, %4 : vector<8x32xf32>
    %6 = math.exp %5 : vector<8x32xf32>
    %cst_3 = arith.constant dense<0.000000e+00> : vector<8xf32>
    %7 = vector.multi_reduction <add>, %6, %cst_3 [1] : vector<8x32xf32> to vector<8xf32>
    %8 = vector.shape_cast %7 : vector<8xf32> to vector<8x1xf32>
    %9 = tpu.iota {dimensions = array<i32: 1>} : vector<8x32xi32>
    %10 = vector.broadcast %1 : vector<8x1xi32> to vector<8x32xi32>
    %11 = arith.cmpi eq, %9, %10 : vector<8x32xi32>
    %cst_4 = arith.constant 0.000000e+00 : f32
    %12 = vector.broadcast %cst_4 : f32 to vector<8x32xf32>
    %13 = arith.select %11, %0, %12 : vector<8x32xi1>, vector<8x32xf32>
    %cst_5 = arith.constant dense<0.000000e+00> : vector<8xf32>
    %14 = vector.multi_reduction <add>, %13, %cst_5 [1] : vector<8x32xf32> to vector<8xf32>
    %15 = vector.shape_cast %14 : vector<8xf32> to vector<8x1xf32>
    %16 = math.log %8 : vector<8x1xf32>
    %17 = arith.addf %16, %3 : vector<8x1xf32>
    %18 = arith.subf %17, %15 : vector<8x1xf32>
    %19 = tpu.iota {dimensions = array<i32: 0>} : vector<8x1xi32>
    %c8_i32 = arith.constant 8 : i32
    %20 = arith.muli %arg0, %c8_i32 : i32
    %21 = vector.broadcast %20 : i32 to vector<8x1xi32>
    %22 = arith.addi %19, %21 : vector<8x1xi32>
    %c8_i32_6 = arith.constant 8 : i32
    %23 = vector.broadcast %c8_i32_6 : i32 to vector<8x1xi32>
    %24 = arith.cmpi slt, %22, %23 : vector<8x1xi32>
    %cst_7 = arith.constant 0.000000e+00 : f32
    %25 = vector.broadcast %cst_7 : f32 to vector<8x1xf32>
    %26 = arith.select %24, %18, %25 : vector<8x1xi1>, vector<8x1xf32>
    %27 = vector.shape_cast %26 : vector<8x1xf32> to vector<1x8x1xf32>
    %cst_8 = arith.constant dense<0.000000e+00> : vector<1xf32>
    %28 = vector.multi_reduction <add>, %27, %cst_8 [1, 2] : vector<1x8x1xf32> to vector<1xf32>
    %29 = vector.shape_cast %28 : vector<1xf32> to vector<1x1x1xf32>
    %30 = vector.extract %29[0, 0, 0] : f32 from vector<1x1x1xf32>
    %31 = vector.broadcast %30 : f32 to vector<1x8x128xf32>
    %c0_9 = arith.constant 0 : index
    %c0_10 = arith.constant 0 : index
    %c0_11 = arith.constant 0 : index
    %32 = vector.load %arg3[%c0_9, %c0_10, %c0_11] : memref<1x8x128xf32, #tpu.memory_space<vmem>>, vector<1x8x128xf32>
    tpu.vector_store %arg3[%c0_9, %c0_10, %c0_11], %31 {strides = array<i32>} : memref<1x8x128xf32, #tpu.memory_space<vmem>>, vector<1x8x128xf32>,
    return
  }
  func.func @transform_0(%arg0: i32) -> (i32, i32) {
    %c0_i32 = arith.constant 0 : i32
    %c0_i32_0 = arith.constant 0 : i32
    return %arg0, %c0_i32 : i32, i32
  }
  func.func @transform_1(%arg0: i32) -> (i32, i32) {
    %c0_i32 = arith.constant 0 : i32
    %c0_i32_0 = arith.constant 0 : i32
    return %arg0, %c0_i32 : i32, i32
  }
  func.func @transform_2(%arg0: i32) -> (i32, i32, i32) {
    %c0_i32 = arith.constant 0 : i32
    %c0_i32_0 = arith.constant 0 : i32
    %c0_i32_1 = arith.constant 0 : i32
    return %arg0, %c0_i32, %c0_i32_0 : i32, i32, i32
  }
}

</mosaic_0001>

<bundles_post_ra>
// kernel: tpu_custom_call.1
= control target key start
LH: loop header
LB: loop body
LE: loop exit
PB: predicated region body
PF: predicated region fallthrough
CT: control target
= control target key end

     0   :  { %vm14_vm0 = vcmask 261120   ;;  %s138_s0 = inlined_call_operand.vmem [shape: f32[8,32], index: 0, kind: input, shape index: {}]   ;;  %s139_s1 = inlined_call_operand.vmem [shape: s32[8,1], index: 1, kind: input, shape index: {}]   ;;  %s140_s2 = inlined_call_operand.hbm [shape: f32[1,8,128], index: 2, kind: output, shape index: {}]  }
   0x1   :  { %v12_v0 = vld [vmem:[%s138_s0] sm:$0xff] }
   0x2   :  { %7 = vsyncpa [#allocation3], 0  ;;  %v15_v1 = vsel %vm14_vm0, %v12_v0, -inf  ;;  %v109_v2 = vmov 0   ;;  %v13_v3 = vld [vmem:[%s139_s1] sm:$0xff]  ;;  %v24_v9 = vlaneseq  ;;  %vm45_vm2 = vcmask 7168  }
   0x3   :  { %78 = vset.pattern.permute.xlu0 %v109_v2  ;;  %s110_s0 = smov [#allocation2]   ;;  %s65_s15 = sshll.u32 %s140_s2, 4  ;;  %s66_s15 = int_to_ptr.hbm [resolvable:$true] %s65_s15 }
   0x4   :  { %16 = vmax.xlane.f32.xlu0 %v15_v1  ;;  %v25_v10 = vand.u32 127, %v24_v9  ;;  %s63_s1 = sshll.u32 %s110_s0, 4  ;;  %s64_s1 = int_to_ptr.vmem [resolvable:$true] %s63_s1 }
  0x18   :  { %27 = vperm.xlu0 %78, %v13_v3  }
  0x77   :  { %v17_v4 = vpop.xlane.xlu0 %16 }
  0x78   :  { %v18_v5 = vsub.f32 %v12_v0, %v17_v4 }
  0x7a   :  { %v19_v6 = vmul.f32 1.442695, %v18_v5 }
  0x7c   :  { %79 = vpow2.f32 %v19_v6 }
  0x82   :  { %v80_v7 = vpop.eup %79 }
  0x83   :  { %v21_v8 = vsel %vm14_vm0, %v80_v7, 0.0 }
  0x84   :  { %22 = vadd.xlane.f32.xlu1 %v21_v8 }
  0x8a   :  { %v28_v11 = vpop.permute.xlu0 %27 }
  0x8b   :  { %vm29_vm1 = vcmp.eq.s32.totalorder %v25_v10, %v28_v11 }
  0x8c   :  { %v30_v12 = vsel %vm29_vm1, %v12_v0, 0.0 }
  0x8d   :  { %v31_v13 = vsel %vm14_vm0, %v30_v12, 0.0 }
  0x8e   :  { %32 = vadd.xlane.f32.xlu1 %v31_v13 }
  0xf7   :  { %v23_v14 = vpop.xlane.xlu1 %22 }
  0xf8   :  { %81 = vlog2.f32 %v23_v14 }
  0xfe   :  { %v82_v15 = vpop.eup %81 }
  0xff   :  { %v35_v16 = vmul.f32 0.6931472, %v82_v15 }
 0x101   :  { %v36_v17 = vadd.f32 %v35_v16, %v17_v4  ;;  %v33_v18 = vpop.xlane.xlu1 %32 }
 0x103   :  { %v37_v19 = vsub.f32 %v36_v17, %v33_v18 }
 0x105   :  { %v46_v20 = vsel %vm45_vm2, %v37_v19, 0.0 }
 0x106   :  { %47 = vadd.xlane.f32.xlu2 %v46_v20 }
 0x179   :  { %v48_v21 = vpop.xlane.xlu2 %47 }
 0x17a   :  { %v49_v22 = vrot.slane %v48_v21, 4 }
 0x17c   :  { %v50_v23 = vadd.f32 %v49_v22, %v48_v21 }
 0x17e   :  { %v51_v24 = vrot.slane %v50_v23, 2 }
 0x180   :  { %v52_v25 = vadd.f32 %v51_v24, %v50_v23 }
 0x182   :  { %v53_v26 = vrot.slane %v52_v25, 1 }
 0x184   :  { %v54_v27 = vadd.f32 %v53_v26, %v52_v25 }
 0x186   :  { %74 = vpush %v54_v27 }
 0x1b7   :  { %s75_s16 = spop %74 }
 0x1b8   :  { %v56_v28 = vstv %s75_s16 }
 0x1b9   :  { %57 = vst [vmem:[#allocation2] sm:$0xff] %v56_v28 }
 0x1ba   :  { %68 = dma.vmem_to_hbm [thread:$0]  %s64_s1, 128, %s66_s15, [#allocation3]  }
 0x1bb   :  { %107 = dma.done.wait [#allocation3], 128  }
 0x1bc   :  { %108 = vsyncadd [#allocation3], 4294967168 }
 0x1bd   :  { %73 = vsyncpa [#allocation3], 1 }

</bundles_post_ra>
